<compile_context>
chip_gen: v5e
topology: v5e:2x2
jax: 0.10.0
libtpu: 0.0.40
codegen_flags: <defaults>
</compile_context>

<pallas_src>
import math

import jax
import jax.numpy as jnp
from jax.experimental import pallas as pl
from jax.experimental.pallas import tpu as pltpu


def _round_up(x, m):
    return ((x + m - 1) // m) * m


def _vmem_capacity_bytes():
    try:
        return int(pltpu.get_tpu_info().vmem_capacity_bytes)
    except Exception:
        return 128 * 1024 * 1024  # conservative fallback (v5e/v6e physical)


def _defaults_for_generation():
    """Returns (tile_m, tile_f, vmem_limit_bytes) tuned per TPU generation.

    Arithmetic intensity of this kernel is ~tile_m FLOPs per weight byte when
    weights are re-streamed per M tile, so tile_m is the roofline knob:
      * v7x-class (64 MiB VMEM, ~3.2 TB/s HBM): tile_m=512 is compute-bound
        and still fits; do NOT claim the whole physical VMEM as the limit.
      * v5e/v6e (128 MiB VMEM): tile_m=1024 makes v6e MXU-bound; ~100 MiB
        scoped limit leaves the compiler internal-scratch headroom.
    """
    cap = _vmem_capacity_bytes()
    if cap <= 80 * 1024 * 1024:                       # v7x-class (64 MiB/TC)
        return 512, 512, int(0.75 * cap)
    return 1024, 512, min(100 * 1024 * 1024, int(0.80 * cap))


# ----------------------------------------------------------------------------
# Kernels
# ----------------------------------------------------------------------------
def _ffn_resident_kernel(x_ref, w1_ref, b1_ref, w2_ref, b2_ref, o_ref):
    # Weights stay VMEM-resident across all M tiles (constant block index ->
    # Pallas does not re-DMA them).  Single pass, no reduction grid.
    h = jnp.dot(x_ref[...], w1_ref[...], preferred_element_type=jnp.float32)
    h = jnp.maximum(h + b1_ref[...], 0.0)
    # TODO(synk): training-mode dropout would use pltpu.prng_seed +
    # pltpu.stateful_bernoulli; module forward is inference -> identity.
    y = jnp.dot(h.astype(w2_ref.dtype), w2_ref[...],
                preferred_element_type=jnp.float32)
    o_ref[...] = (y + b2_ref[...]).astype(o_ref.dtype)


def _ffn_tiled_f32out_kernel(x_ref, w1_ref, b1_ref, w2_ref, b2_ref, o_ref):
    # d_ff-tiled path with f32 output: accumulate directly into the output
    # block (saves the (tile_m, d_model) f32 scratch + the finalize copy).
    f = pl.program_id(1)
    h = jnp.dot(x_ref[...], w1_ref[...], preferred_element_type=jnp.float32)
    h = jnp.maximum(h + b1_ref[...], 0.0)
    part = jnp.dot(h.astype(w2_ref.dtype), w2_ref[...],
                   preferred_element_type=jnp.float32)

    @pl.when(f == 0)
    def _():
        o_ref[...] = part + b2_ref[...]

    @pl.when(f > 0)
    def _():
        o_ref[...] += part


def _ffn_tiled_acc_kernel(x_ref, w1_ref, b1_ref, w2_ref, b2_ref, o_ref,
                          acc_ref):
    # d_ff-tiled path with an f32 VMEM accumulator (for narrow output dtypes).
    f = pl.program_id(1)

    @pl.when(f == 0)
    def _():
        acc_ref[...] = jnp.zeros_like(acc_ref)

    h = jnp.dot(x_ref[...], w1_ref[...], preferred_element_type=jnp.float32)
    h = jnp.maximum(h + b1_ref[...], 0.0)
    acc_ref[...] += jnp.dot(h.astype(w2_ref.dtype), w2_ref[...],
                            preferred_element_type=jnp.float32)

    @pl.when(f == pl.num_programs(1) - 1)
    def _():
        o_ref[...] = (acc_ref[...] + b2_ref[...]).astype(o_ref.dtype)


# ----------------------------------------------------------------------------
# Wrapper
# ----------------------------------------------------------------------------
def feed_forward_block(x, w1, b1, w2, b2, *, tile_m=None, tile_f=None,
                       compute_dtype=jnp.bfloat16, out_dtype=None,
                       force_tiled=False):
    """y = relu(x @ W1 + b1) @ W2 + b2.   x: (batch, seq, d_model).

    W1: (d_model, d_ff), W2: (d_ff, d_model) (transposed vs nn.Linear.weight).
    compute_dtype=jnp.float32 gives exact parity with the PyTorch module.
    """
    batch, seq, d_model = x.shape
    d_ff = w1.shape[1]
    M = batch * seq
    out_dtype = x.dtype if out_dtype is None else out_dtype
    out_itemsize = jnp.dtype(out_dtype).itemsize

    def_tm, def_tf, vmem_limit = _defaults_for_generation()
    tile_m = def_tm if tile_m is None else tile_m
    tile_f = def_tf if tile_f is None else tile_f
    tile_m = min(tile_m, _round_up(M, 8))   # sublane multiple of 8
    tile_f = min(tile_f, d_ff)

    cd = jnp.dtype(compute_dtype)
    # Cast activations + weights to the compute dtype in the wrapper: halves
    # their DMA bytes / VMEM footprint for bf16 and removes the per-grid-step
    # in-kernel cast of the whole x tile.  Biases stay f32 (added to the f32
    # accumulator / matmul result).
    x2d = x.reshape(M, d_model).astype(cd)
    w1c = w1.astype(cd)
    w2c = w2.astype(cd)
    b1_2d = b1.reshape(1, d_ff).astype(jnp.float32)
    b2_2d = b2.reshape(1, d_model).astype(jnp.float32)

    grid_m = pl.cdiv(M, tile_m)   # last M tile may be partial; Pallas masks it
    flops = 2 * 2 * M * d_model * d_ff
    common_bytes = (x2d.size * cd.itemsize
                    + M * d_model * out_itemsize
                    + (b1_2d.size + b2_2d.size) * 4)

    # --- weights-resident fast path -----------------------------------------
    weight_bytes = (w1c.size + w2c.size) * cd.itemsize
    # Budget: weights are (conservatively) double-buffered by the pipeline,
    # plus double-buffered x and out tiles, plus compiler internal scratch.
    act_bytes = 2 * tile_m * d_model * (cd.itemsize + out_itemsize)
    use_resident = (not force_tiled) and (
        2 * weight_bytes + act_bytes <= int(0.7 * vmem_limit))

    if use_resident:
        cost = pl.CostEstimate(flops=flops, transcendentals=0,
                               bytes_accessed=int(common_bytes + weight_bytes))
        out = pl.pallas_call(
            _ffn_resident_kernel,
            out_shape=jax.ShapeDtypeStruct((M, d_model), out_dtype),
            grid_spec=pltpu.PrefetchScalarGridSpec(
                num_scalar_prefetch=0,
                grid=(grid_m,),
                in_specs=[
                    pl.BlockSpec((tile_m, d_model), lambda i: (i, 0)),  # x
                    pl.BlockSpec((d_model, d_ff), lambda i: (0, 0)),    # W1
                    pl.BlockSpec((1, d_ff), lambda i: (0, 0)),          # b1
                    pl.BlockSpec((d_ff, d_model), lambda i: (0, 0)),    # W2
                    pl.BlockSpec((1, d_model), lambda i: (0, 0)),       # b2
                ],
                out_specs=pl.BlockSpec((tile_m, d_model), lambda i: (i, 0)),
            ),
            compiler_params=pltpu.CompilerParams(
                dimension_semantics=("parallel",),
                vmem_limit_bytes=vmem_limit,
            ),
            cost_estimate=cost,
        )(x2d, w1c, b1_2d, w2c, b2_2d)
        return out.reshape(batch, seq, d_model)

    # --- streamed / d_ff-tiled path ------------------------------------------
    # d_ff is the reduction axis of the second matmul: a partial f tile would
    # feed stale VMEM garbage into the accumulation, so zero-pad the weights
    # once (cheap, weights only) if tile_f doesn't divide d_ff.
    if d_ff % tile_f:
        d_ff_p = _round_up(d_ff, tile_f)
        pad = d_ff_p - d_ff
        w1c = jnp.pad(w1c, ((0, 0), (0, pad)))
        b1_2d = jnp.pad(b1_2d, ((0, 0), (0, pad)))
        w2c = jnp.pad(w2c, ((0, pad), (0, 0)))
        d_ff = d_ff_p

    grid_f = d_ff // tile_f
    grid = (grid_m, grid_f)

    # Weights are re-streamed once per M tile in this path -> count them so.
    weight_bytes = (w1c.size + w2c.size) * cd.itemsize
    cost = pl.CostEstimate(flops=flops, transcendentals=0,
                           bytes_accessed=int(common_bytes
                                              + grid_m * weight_bytes))

    f32_out = jnp.dtype(out_dtype) == jnp.dtype(jnp.float32)
    kernel = _ffn_tiled_f32out_kernel if f32_out else _ffn_tiled_acc_kernel
    scratch = [] if f32_out else [pltpu.VMEM((tile_m, d_model), jnp.float32)]

    out = pl.pallas_call(
        kernel,
        out_shape=jax.ShapeDtypeStruct((M, d_model), out_dtype),
        grid_spec=pltpu.PrefetchScalarGridSpec(
            num_scalar_prefetch=0,
            grid=grid,
            in_specs=[
                pl.BlockSpec((tile_m, d_model), lambda i, f: (i, 0)),   # x
                pl.BlockSpec((d_model, tile_f), lambda i, f: (0, f)),   # W1 f
                pl.BlockSpec((1, tile_f), lambda i, f: (0, f)),         # b1 f
                pl.BlockSpec((tile_f, d_model), lambda i, f: (f, 0)),   # W2 f
                pl.BlockSpec((1, d_model), lambda i, f: (0, 0)),        # b2
            ],
            out_specs=pl.BlockSpec((tile_m, d_model), lambda i, f: (i, 0)),
            scratch_shapes=scratch,
        ),
        compiler_params=pltpu.CompilerParams(
            dimension_semantics=("parallel", "arbitrary"),
            vmem_limit_bytes=vmem_limit,
        ),
        cost_estimate=cost,
    )(x2d, w1c, b1_2d, w2c, b2_2d)
    return out.reshape(batch, seq, d_model)


def init_params(key, d_model, d_ff):
    """Deterministic init mimicking nn.Linear default (uniform +/- 1/sqrt(fan_in))."""
    k1, k2, k3, k4 = jax.random.split(key, 4)
    bound1 = 1.0 / math.sqrt(d_model)
    bound2 = 1.0 / math.sqrt(d_ff)
    w1 = jax.random.uniform(k1, (d_model, d_ff), jnp.float32, -bound1, bound1)
    b1 = jax.random.uniform(k2, (d_ff,), jnp.float32, -bound1, bound1)
    w2 = jax.random.uniform(k3, (d_ff, d_model), jnp.float32, -bound2, bound2)
    b2 = jax.random.uniform(k4, (d_model,), jnp.float32, -bound2, bound2)
    return w1, b1, w2, b2


if __name__ == "__main__":
    key = jax.random.PRNGKey(0)
    batch, seq, d_model, d_ff = 2, 8, 32, 64

    kx, kp = jax.random.split(key)
    x = jax.random.normal(kx, (batch, seq, d_model), jnp.float32)
    w1, b1, w2, b2 = init_params(kp, d_model, d_ff)
    ref = jnp.maximum(x @ w1 + b1, 0.0) @ w2 + b2

    # f32 compute path (weights-resident): tight check vs the reference.
    y32 = feed_forward_block(x, w1, b1, w2, b2, compute_dtype=jnp.float32)
    y32 = jax.block_until_ready(y32)
    assert y32.shape == (batch, seq, d_model)
    assert jnp.allclose(y32, ref, atol=1e-5, rtol=1e-5)

    # Default bf16 MXU path (weights-resident): looser tolerance.
    y16 = feed_forward_block(x, w1, b1, w2, b2)
    y16 = jax.block_until_ready(y16)
    assert y16.shape == (batch, seq, d_model)
    assert jnp.allclose(y16, ref, atol=3e-2, rtol=3e-2)

    # Streamed / d_ff-tiled path (forced), f32 output accumulated in o_ref.
    d_ff2 = 256
    w1b, b1b, w2b, b2b = init_params(jax.random.PRNGKey(1), d_model, d_ff2)
    ref2 = jnp.maximum(x @ w1b + b1b, 0.0) @ w2b + b2b
    y_t32 = feed_forward_block(x, w1b, b1b, w2b, b2b,
                               compute_dtype=jnp.float32, tile_f=128,
                               force_tiled=True)
    y_t32 = jax.block_until_ready(y_t32)
    assert jnp.allclose(y_t32, ref2, atol=1e-5, rtol=1e-5)

    # Streamed path with a narrow output dtype (scratch-accumulator variant).
    y_t16 = feed_forward_block(x, w1b, b1b, w2b, b2b, tile_f=128,
                               force_tiled=True, out_dtype=jnp.bfloat16)
    y_t16 = jax.block_until_ready(y_t16)
    assert y_t16.dtype == jnp.bfloat16
    assert jnp.allclose(y_t16.astype(jnp.float32), ref2, atol=5e-2, rtol=5e-2)

    print("KERNEL_OK")
</pallas_src>

<mosaic_0001>
module attributes {stable_mosaic.version = 11 : i64} {
  func.func @_ffn_resident_kernel(%arg0: i32, %arg1: memref<16x32xf32, #tpu.memory_space<vmem>>, %arg2: memref<32x64xf32, #tpu.memory_space<vmem>>, %arg3: memref<1x64xf32, #tpu.memory_space<vmem>>, %arg4: memref<64x32xf32, #tpu.memory_space<vmem>>, %arg5: memref<1x32xf32, #tpu.memory_space<vmem>>, %arg6: memref<16x32xf32, #tpu.memory_space<vmem>>) attributes {dimension_semantics = [#tpu.dimension_semantics<parallel>], iteration_bounds = array<i64: 1>, scalar_prefetch = 0 : i64, scratch_operands = 0 : i64, tpu.core_type = #tpu.core_type<tc>, window_params = [{transform_indices = @transform_0, window_bounds = array<i64: 16, 32>}, {pipeline_mode = #tpu.pipeline_mode<synchronous>, transform_indices = @transform_1, window_bounds = array<i64: 32, 64>}, {pipeline_mode = #tpu.pipeline_mode<synchronous>, transform_indices = @transform_2, window_bounds = array<i64: 1, 64>}, {pipeline_mode = #tpu.pipeline_mode<synchronous>, transform_indices = @transform_3, window_bounds = array<i64: 64, 32>}, {pipeline_mode = #tpu.pipeline_mode<synchronous>, transform_indices = @transform_4, window_bounds = array<i64: 1, 32>}, {transform_indices = @transform_5, window_bounds = array<i64: 16, 32>}]} {
    %c0 = arith.constant 0 : index
    %c0_0 = arith.constant 0 : index
    %0 = vector.load %arg1[%c0, %c0_0] : memref<16x32xf32, #tpu.memory_space<vmem>>, vector<16x32xf32>
    %c0_1 = arith.constant 0 : index
    %c0_2 = arith.constant 0 : index
    %1 = vector.load %arg2[%c0_1, %c0_2] : memref<32x64xf32, #tpu.memory_space<vmem>>, vector<32x64xf32>
    %cst = arith.constant dense<0.000000e+00> : vector<16x64xf32>
    %2 = tpu.matmul %0, %1, %cst {dimension_numbers = #tpu.dot_dimension_numbers<[1], [0], [0], [1], [0, 0, 1, 1], [], []>} : vector<16x32xf32>, vector<32x64xf32>, vector<16x64xf32> -> vector<16x64xf32>
    %c0_3 = arith.constant 0 : index
    %c0_4 = arith.constant 0 : index
    %3 = vector.load %arg3[%c0_3, %c0_4] : memref<1x64xf32, #tpu.memory_space<vmem>>, vector<1x64xf32>
    %4 = vector.broadcast %3 : vector<1x64xf32> to vector<16x64xf32>
    %5 = arith.addf %2, %4 : vector<16x64xf32>
    %cst_5 = arith.constant 0.000000e+00 : f32
    %6 = vector.broadcast %cst_5 : f32 to vector<16x64xf32>
    %7 = arith.maximumf %5, %6 : vector<16x64xf32>
    %c0_6 = arith.constant 0 : index
    %c0_7 = arith.constant 0 : index
    %8 = vector.load %arg4[%c0_6, %c0_7] : memref<64x32xf32, #tpu.memory_space<vmem>>, vector<64x32xf32>
    %cst_8 = arith.constant dense<0.000000e+00> : vector<16x32xf32>
    %9 = tpu.matmul %7, %8, %cst_8 {dimension_numbers = #tpu.dot_dimension_numbers<[1], [0], [0], [1], [0, 0, 1, 1], [], []>} : vector<16x64xf32>, vector<64x32xf32>, vector<16x32xf32> -> vector<16x32xf32>
    %c0_9 = arith.constant 0 : index
    %c0_10 = arith.constant 0 : index
    %10 = vector.load %arg5[%c0_9, %c0_10] : memref<1x32xf32, #tpu.memory_space<vmem>>, vector<1x32xf32>
    %11 = vector.broadcast %10 : vector<1x32xf32> to vector<16x32xf32>
    %12 = arith.addf %9, %11 : vector<16x32xf32>
    %c0_11 = arith.constant 0 : index
    %c0_12 = arith.constant 0 : index
    %13 = vector.load %arg6[%c0_11, %c0_12] : memref<16x32xf32, #tpu.memory_space<vmem>>, vector<16x32xf32>
    tpu.vector_store %arg6[%c0_11, %c0_12], %12 {strides = array<i32>} : memref<16x32xf32, #tpu.memory_space<vmem>>, vector<16x32xf32>,
    return
  }
  func.func @transform_0(%arg0: i32) -> (i32, i32) {
    %c0_i32 = arith.constant 0 : i32
    %c0_i32_0 = arith.constant 0 : i32
    return %arg0, %c0_i32 : i32, i32
  }
  func.func @transform_1(%arg0: i32) -> (i32, i32) {
    %c0_i32 = arith.constant 0 : i32
    %c0_i32_0 = arith.constant 0 : i32
    %c0_i32_1 = arith.constant 0 : i32
    return %c0_i32, %c0_i32_0 : i32, i32
  }
  func.func @transform_2(%arg0: i32) -> (i32, i32) {
    %c0_i32 = arith.constant 0 : i32
    %c0_i32_0 = arith.constant 0 : i32
    %c0_i32_1 = arith.constant 0 : i32
    return %c0_i32, %c0_i32_0 : i32, i32
  }
  func.func @transform_3(%arg0: i32) -> (i32, i32) {
    %c0_i32 = arith.constant 0 : i32
    %c0_i32_0 = arith.constant 0 : i32
    %c0_i32_1 = arith.constant 0 : i32
    return %c0_i32, %c0_i32_0 : i32, i32
  }
  func.func @transform_4(%arg0: i32) -> (i32, i32) {
    %c0_i32 = arith.constant 0 : i32
    %c0_i32_0 = arith.constant 0 : i32
    %c0_i32_1 = arith.constant 0 : i32
    return %c0_i32, %c0_i32_0 : i32, i32
  }
  func.func @transform_5(%arg0: i32) -> (i32, i32) {
    %c0_i32 = arith.constant 0 : i32
    %c0_i32_0 = arith.constant 0 : i32
    return %arg0, %c0_i32 : i32, i32
  }
}

</mosaic_0001>

<bundles_post_ra>
// kernel: tpu_custom_call.1
= control target key start
LH: loop header
LB: loop body
LE: loop exit
PB: predicated region body
PF: predicated region fallthrough
CT: control target
= control target key end

     0   :  { %s260_s0 = inlined_call_operand.vmem [shape: f32[16,32], index: 0, kind: input, shape index: {}]   ;;  %s261_s1 = inlined_call_operand.vmem [shape: f32[32,64], index: 1, kind: input, shape index: {}]   ;;  %s262_s2 = inlined_call_operand.vmem [shape: f32[1,64], index: 2, kind: input, shape index: {}]   ;;  %s263_s3 = inlined_call_operand.vmem [shape: f32[64,32], index: 3, kind: input, shape index: {}]   ;;  %s264_s4 = inlined_call_operand.vmem [shape: f32[1,32], index: 4, kind: input, shape index: {}]   ;;  %s265_s5 = inlined_call_operand.hbm [shape: f32[16,32], index: 5, kind: output, shape index: {}]  }
   0x1   :  { %v26_v0 = vld [vmem:[%s261_s1 + $0x18] sm:$0xff]  ;;  %v25_v1 = vld [vmem:[%s261_s1 + $0x10] sm:$0xff]  ;;  %v24_v2 = vld [vmem:[%s261_s1 + $0x8] sm:$0xff] }
   0x2   :  { %129 = vmatpush.msra.mxu3 %v26_v0  ;;  %50 = vmatpush.msra.mxu0 %v26_v0  ;;  %v70_v3 = vld [vmem:[%s263_s3 + $0x38] sm:$0xff]  ;;  %v69_v4 = vld [vmem:[%s263_s3 + $0x30] sm:$0xff]  ;;  %v23_v5 = vld [vmem:[%s261_s1] sm:$0xff] }
   0x3   :  { %133 = vmatpush.msra.mxu2 %v70_v3  ;;  %90 = vmatpush.msra.mxu1 %v70_v3 }
   0x4   :  { %130 = vmatpush.msra.mxu3 %v25_v1  ;;  %51 = vmatpush.msra.mxu0 %v25_v1 }
   0x5   :  { %10 = vsyncpa [#allocation3], 0  ;;  %v22_v6 = vld [vmem:[%s260_s0 + $0x8] sm:$0xff]  ;;  %vm31_vm0 = vcmask 261120   ;;  %v21_v7 = vld [vmem:[%s260_s0] sm:$0xff]  ;;  %134 = vmatpush.msra.mxu2 %v69_v4  ;;  %91 = vmatpush.msra.mxu1 %v69_v4  ;;  %vm75_vm1 = vcmask 523264  }
   0x6   :  { %131 = vmatpush.msra.mxu3 %v24_v2  ;;  %52 = vmatpush.msra.mxu0 %v24_v2  ;;  %v68_v8 = vld [vmem:[%s263_s3 + $0x28] sm:$0xff]  ;;  %v67_v9 = vld [vmem:[%s263_s3 + $0x20] sm:$0xff]  ;;  %v66_v10 = vld [vmem:[%s263_s3 + $0x18] sm:$0xff]  ;;  %s113_s25 = sshll.u32 %s265_s5, 4  ;;  %s173_s26 = smov 128   ;;  %s114_s25 = int_to_ptr.hbm [resolvable:$true] %s113_s25 }
   0x7   :  { %135 = vmatpush.msra.mxu2 %v68_v8  ;;  %92 = vmatpush.msra.mxu1 %v68_v8  ;;  %v65_v11 = vld [vmem:[%s263_s3 + $0x10] sm:$0xff]  ;;  %v64_v12 = vld [vmem:[%s263_s3 + $0x8] sm:$0xff]  ;;  %v63_v13 = vld [vmem:[%s263_s3] sm:$0xff]  ;;  %s172_s3 = smov [#allocation2]   ;;  %s174_s27 = smov 8  }
   0x8   :  { %132 = vmatpush.msra.mxu3 %v23_v5  ;;  %53 = vmatpush.msra.mxu0 %v23_v5  ;;  %v144_v14 = vld [vmem:[%s262_s2] ss:$0 sm:$0xff]  ;;  %s111_s23 = sshll.u32 %s172_s3, 4  ;;  %s112_s23 = int_to_ptr.vmem [resolvable:$true] %s111_s23 }
   0x9   :  { %126 = vmatmul.msk.f32.vlgmr.msra.gmra.mxu3 %vm31_vm0, %v22_v6  ;;  %125 = vmatmul.msk.f32.vlgmr.msra.gmra.mxu0 %vm31_vm0, %v21_v7  ;;  %v145_v21 = vld [vmem:[%s264_s4] ss:$0 sm:$0xff] }
   0xa   :  { %136 = vmatpush.msra.mxu2 %v67_v9  ;;  %93 = vmatpush.msra.mxu1 %v67_v9 }
   0xc   :  { %137 = vmatpush.msra.mxu2 %v66_v10  ;;  %94 = vmatpush.msra.mxu1 %v66_v10 }
   0xe   :  { %138 = vmatpush.msra.mxu2 %v65_v11  ;;  %95 = vmatpush.msra.mxu1 %v65_v11 }
  0x10   :  { %139 = vmatpush.msra.mxu2 %v64_v12  ;;  %96 = vmatpush.msra.mxu1 %v64_v12 }
  0x12   :  { %140 = vmatpush.msra.mxu2 %v63_v13  ;;  %97 = vmatpush.msra.mxu1 %v63_v13 }
  0x86   :  { %v55_v15 = vpop.f32.mrf.mxu0 }
  0x87   :  { %v56_v16 = vadd.f32 %v144_v14, %v55_v15 }
  0x89   :  { %v61_v17 = vmax.f32 %v56_v16, 0.0 }
  0x8b   :  { %127 = vmatmul.msk.f32.vlgmr.msra.gmra.mxu1 %vm75_vm1, %v61_v17 }
  0x8c   :  { %v58_v18 = vpop.f32.mrf.mxu3 }
  0x8d   :  { %v59_v19 = vadd.f32 %v144_v14, %v58_v18 }
  0x8f   :  { %v62_v20 = vmax.f32 %v59_v19, 0.0 }
  0x91   :  { %128 = vmatmul.msk.f32.vlgmr.msra.gmra.mxu2 %vm75_vm1, %v62_v20 }
 0x108   :  { %v99_v22 = vpop.f32.mrf.mxu1 }
 0x109   :  { %v100_v23 = vadd.f32 %v145_v21, %v99_v22 }
 0x10b   :  { %105 = vst.msk [vmem:[#allocation2] sm:$0xff] %vm31_vm0, %v100_v23 }
 0x114   :  { %v102_v24 = vpop.f32.mrf.mxu2 }
 0x115   :  { %v103_v25 = vadd.f32 %v145_v21, %v102_v24 }
 0x117   :  { %106 = vst.msk [vmem:[#allocation2 + $0x8] sm:$0xff] %vm31_vm0, %v103_v25 }
 0x118   :  { %119 = dma.vmem_to_hbm [thread:$0]  %s112_s23, 256, %s114_s25, [#allocation3], %s173_s26, %s173_s26, %s174_s27  }
 0x119   :  { %170 = dma.done.wait [#allocation3], 256  }
 0x11a   :  { %171 = vsyncadd [#allocation3], 4294967040 }
 0x11b   :  { %124 = vsyncpa [#allocation3], 1 }

</bundles_post_ra>
